<compile_context>
chip_gen: v7x
topology: tpu7x:2x2x1
jax: 0.10.0
libtpu: 0.0.40
codegen_flags: <defaults>
</compile_context>

<pallas_src>
import functools

import jax
import jax.numpy as jnp
from jax.experimental import pallas as pl
from jax.experimental.pallas import tpu as pltpu


def _round_up(x, m):
    return (x + m - 1) // m * m


# ----------------------------------------------------------------------------
# Kernel: o[s, :] = x[s, :] + tile(g[s, :], lane axis)
#   x_ref / o_ref : (ts, tl)      g_ref : (ts, H)   (g already gated, x.dtype)
# ----------------------------------------------------------------------------
def _pos_enc_kernel(x_ref, g_ref, o_ref, *, nrep, lanes):
    add = jnp.tile(g_ref[...], (1, nrep))        # (ts, nrep*H), x.dtype
    if add.shape[-1] != lanes:
        add = add[:, :lanes]                     # static, only for ragged H
    o_ref[...] = x_ref[...] + add


def _vmem_budget_bytes():
    """Generation-aware working-set budget, kept well under physical VMEM."""
    try:
        cap = pltpu.get_tpu_info().vmem_capacity_bytes
    except Exception:
        return 12 * 1024 * 1024                  # conservative fallback
    if cap <= 64 * 1024 * 1024:                  # v7x-class TC: 64 MiB VMEM
        return 40 * 1024 * 1024
    return 26 * 1024 * 1024                      # v5e / v6e: 128 MiB VMEM


def _choose_tiles(S, Lpad, H, itemsize, budget):
    """Pick (ts, tl): seq rows / lane columns per grid step.

    Per-step VMEM ~ ts * (2*x_in + 2*out + add_temp + 2*g) with BlockSpec
    double buffering of the streamed tiles.
    """
    def step_bytes(ts, tl):
        return ts * (5 * tl + 2 * H) * itemsize

    # Lane tile: full width unless even 8 rows would blow the budget
    # (only possible for huge B*H, where H is realistically a multiple of 128).
    tl = Lpad
    if step_bytes(8, tl) > budget and H % 128 == 0:
        tl = max(H, (budget // (8 * 5 * itemsize)) // H * H)

    per_row = (5 * tl + 2 * H) * itemsize
    ts = max(8, (budget // max(per_row, 1)) // 8 * 8)
    ts = min(ts, S)

    # Ensure >=2 grid steps when possible so v7x's second TensorCore isn't
    # idle; costs one extra ~0.35us step on single-core v5e/v6e (negligible).
    if ts >= S and S > 8 and tl >= Lpad:
        ts = min(ts, _round_up(pl.cdiv(S, 2), 8))
    return ts, tl


def positional_encoder_forward(x, pe, pos_embed_weight, *, force_pallas=False):
    """x: (S, B, H).  pe / pos_embed_weight: (max_seq_len, H)."""
    S, B, H = x.shape
    if S > pe.shape[0]:
        raise ValueError(f"seq_len {S} exceeds max_seq_len {pe.shape[0]}")

    # Pre-gate the tiny (S, H) table (wrapper op touches only the table, not
    # the big stream) and cast once to x.dtype.
    g = (pe[:S].astype(jnp.float32)
         * jax.nn.sigmoid(pos_embed_weight[:S].astype(jnp.float32))
         ).astype(x.dtype)

    # Tiny problems are pure fixed overhead for a custom call; let XLA fuse.
    if not force_pallas and S * B * H * x.dtype.itemsize < (1 << 20):
        return x + g[:, None, :]

    L = B * H
    Lpad = _round_up(L, 128)                 # lane-dense: full-width vst only
    itemsize = x.dtype.itemsize
    budget = _vmem_budget_bytes()
    ts, tl = _choose_tiles(S, Lpad, H, itemsize, budget)
    nrep = pl.cdiv(tl, H)
    grid = (pl.cdiv(S, ts), pl.cdiv(Lpad, tl))

    # (S, B*H) slab: column index = b*H + h, so the batch broadcast of the
    # gated table is a lane-axis jnp.tile inside the kernel.  (If this layout
    # ever changes to (S*B, H), the broadcast must become a sublane repeat.)
    x2 = x.reshape(S, L)
    if Lpad != L:
        x2 = jnp.pad(x2, ((0, 0), (0, Lpad - L)))

    cost = pl.CostEstimate(
        flops=S * Lpad,
        transcendentals=0,
        bytes_accessed=2 * S * Lpad * itemsize + S * H * itemsize)

    out2 = pl.pallas_call(
        functools.partial(_pos_enc_kernel, nrep=nrep, lanes=tl),
        out_shape=jax.ShapeDtypeStruct((S, Lpad), x.dtype),
        grid_spec=pltpu.PrefetchScalarGridSpec(
            num_scalar_prefetch=0,
            grid=grid,
            in_specs=[
                pl.BlockSpec((ts, tl), lambda s, l: (s, l)),   # x slab
                pl.BlockSpec((ts, H), lambda s, l: (s, 0)),    # gated table
            ],
            out_specs=pl.BlockSpec((ts, tl), lambda s, l: (s, l)),
        ),
        compiler_params=pltpu.CompilerParams(
            dimension_semantics=("parallel", "parallel"),
            vmem_limit_bytes=budget + (8 << 20)),
        cost_estimate=cost,
    )(x2, g)

    if Lpad != L:
        out2 = out2[:, :L]
    return out2.reshape(S, B, H)


# ----------------------------------------------------------------------------
# Deterministic parameter construction (matches __init__ shapes/semantics).
# ----------------------------------------------------------------------------
def make_params(hidden_dim, max_seq_len=300):
    pos = jnp.arange(max_seq_len, dtype=jnp.float32)[:, None]        # (L, 1)
    i_even = jnp.arange(0, hidden_dim, 2, dtype=jnp.float32)         # (H/2,)
    denom_sin = jnp.power(10000.0, 2.0 * i_even / hidden_dim)
    denom_cos = jnp.power(10000.0, 2.0 * (i_even + 1.0) / hidden_dim)
    pe = jnp.zeros((max_seq_len, hidden_dim), dtype=jnp.float32)
    pe = pe.at[:, 0::2].set(jnp.sin(pos / denom_sin))
    pe = pe.at[:, 1::2].set(jnp.cos(pos / denom_cos))
    # nn.Parameter(torch.ones_like(pe))
    pos_embed_weight = jnp.ones((max_seq_len, hidden_dim), dtype=jnp.float32)
    return pe, pos_embed_weight


def reference_forward(x, pe, w):
    S = x.shape[0]
    pe_use = pe[:S] * jax.nn.sigmoid(w[:S])          # (S, H)
    return x + pe_use[:, None, :]                    # broadcast over batch


if __name__ == "__main__":
    hidden_dim = 32
    max_seq_len = 300
    seq_len = 8
    batch = 2

    key = jax.random.PRNGKey(0)
    x = jax.random.normal(key, (seq_len, batch, hidden_dim), dtype=jnp.float32)

    pe, pos_embed_weight = make_params(hidden_dim, max_seq_len)

    # Force the Pallas path so the kernel itself is exercised at test shapes.
    out = positional_encoder_forward(x, pe, pos_embed_weight, force_pallas=True)
    out = jax.block_until_ready(out)

    ref = reference_forward(x, pe, pos_embed_weight)
    assert out.shape == (seq_len, batch, hidden_dim)
    assert jnp.allclose(out, ref, atol=1e-5, rtol=1e-5), "mismatch vs reference"

    print("KERNEL_OK")
</pallas_src>

<mosaic_0001>
module attributes {stable_mosaic.version = 11 : i64} {
  func.func @_pos_enc_kernel(%arg0: i32, %arg1: i32, %arg2: memref<8x128xf32, #tpu.memory_space<vmem>>, %arg3: memref<8x32xf32, #tpu.memory_space<vmem>>, %arg4: memref<8x128xf32, #tpu.memory_space<vmem>>) attributes {dimension_semantics = [#tpu.dimension_semantics<parallel>, #tpu.dimension_semantics<parallel>], iteration_bounds = array<i64: 1, 1>, scalar_prefetch = 0 : i64, scratch_operands = 0 : i64, tpu.core_type = #tpu.core_type<tc>, window_params = [{transform_indices = @transform_0, window_bounds = array<i64: 8, 128>}, {transform_indices = @transform_1, window_bounds = array<i64: 8, 32>}, {transform_indices = @transform_2, window_bounds = array<i64: 8, 128>}]} {
    %c0 = arith.constant 0 : index
    %c0_0 = arith.constant 0 : index
    %0 = vector.load %arg3[%c0, %c0_0] : memref<8x32xf32, #tpu.memory_space<vmem>>, vector<8x32xf32>
    %1 = tpu.concatenate %0, %0, %0, %0 in 1 : vector<8x32xf32>, vector<8x32xf32>, vector<8x32xf32>, vector<8x32xf32> -> vector<8x128xf32>
    %c0_1 = arith.constant 0 : index
    %c0_2 = arith.constant 0 : index
    %2 = vector.load %arg2[%c0_1, %c0_2] : memref<8x128xf32, #tpu.memory_space<vmem>>, vector<8x128xf32>
    %3 = arith.addf %2, %1 : vector<8x128xf32>
    %c0_3 = arith.constant 0 : index
    %c0_4 = arith.constant 0 : index
    %4 = vector.load %arg4[%c0_3, %c0_4] : memref<8x128xf32, #tpu.memory_space<vmem>>, vector<8x128xf32>
    tpu.vector_store %arg4[%c0_3, %c0_4], %3 {strides = array<i32>} : memref<8x128xf32, #tpu.memory_space<vmem>>, vector<8x128xf32>,
    return
  }
  func.func @transform_0(%arg0: i32, %arg1: i32) -> (i32, i32) {
    %c0_i32 = arith.constant 0 : i32
    return %arg0, %arg1 : i32, i32
  }
  func.func @transform_1(%arg0: i32, %arg1: i32) -> (i32, i32) {
    %c0_i32 = arith.constant 0 : i32
    %c0_i32_0 = arith.constant 0 : i32
    return %arg0, %c0_i32 : i32, i32
  }
  func.func @transform_2(%arg0: i32, %arg1: i32) -> (i32, i32) {
    %c0_i32 = arith.constant 0 : i32
    return %arg0, %arg1 : i32, i32
  }
}

</mosaic_0001>

<bundles_post_ra>
// kernel: tpu_custom_call.1
= control target key start
LH: loop header
LB: loop body
LE: loop exit
PB: predicated region body
PF: predicated region fallthrough
CT: control target
= control target key end

     0   :  { %7 = vsyncpa [#allocation3], 0  ;;  %s207_s0 = inlined_call_operand.hbm [shape: f32[8,128], index: 0, kind: input, shape index: {}]   ;;  %s208_s1 = inlined_call_operand.hbm [shape: f32[8,32], index: 1, kind: input, shape index: {}]   ;;  %s209_s2 = inlined_call_operand.hbm [shape: f32[8,128], index: 2, kind: output, shape index: {}]  }
   0x1   :  { %8 = vsyncpa [#allocation6], 0 }
   0x2   :  { %9 = vsyncpa [#allocation4], 0  ;;  %s150_s9 = smov [#allocation2]   ;;  %s151_s11 = smov [#allocation5]  }
   0x3   :  { %s16_s10 = sshll.u32 %s150_s9, 4  ;;  %s26_s12 = sshll.u32 %s151_s11, 4  ;;  %s17_s10 = int_to_ptr.vmem [resolvable:$true] %s16_s10  ;;  %s27_s12 = int_to_ptr.vmem [resolvable:$true] %s26_s12 }
   0x4   :  { %s78_s15 = scalar_lea.hbm %s207_s0, 128 }
   0x5   :  { %p79_p0 = scmp.ne.s32.totalorder %s207_s0, %s78_s15  ;;  %p82_p1 = scmp.lt.u32.totalorder %s78_s15, %s207_s0 }
   0x7   :  { %p84_p2 = pnand %p82_p1, %p79_p0 }
   0x9   :  { %87 = shalt.err (!%p84_p2)
}
   0xa   :  { %s88_s20 = scalar_lea.vmem %s17_s10, 128  ;;  %p93_p4 = scmp.lt.s32.totalorder %s17_s10, %s17_s10 }
   0xb   :  { %p89_p3 = scmp.ne.s32.totalorder %s17_s10, %s88_s20  ;;  %p94_p5 = scmp.lt.s32.totalorder %s88_s20, %s88_s20 }
   0xd   :  { %p95_p6 = por %p94_p5, %p93_p4 }
   0xf   :  { %p96_p7 = pnand %p95_p6, %p89_p3 }
  0x11   :  { %99 = shalt.err (!%p96_p7)
}
  0x12   :  { %19 = dma.hbm_to_vmem [thread:$0]  %s207_s0, 128, %s17_s10, [#allocation3]  }
  0x13   :  { %s100_s25 = scalar_lea.hbm %s208_s1, 128 }
  0x14   :  { %p101_p8 = scmp.ne.s32.totalorder %s208_s1, %s100_s25  ;;  %p104_p9 = scmp.lt.u32.totalorder %s100_s25, %s208_s1 }
  0x16   :  { %p106_p10 = pnand %p104_p9, %p101_p8 }
  0x18   :  { %109 = shalt.err (!%p106_p10)
}
  0x19   :  { %s110_s30 = scalar_lea.vmem %s27_s12, 128  ;;  %p115_p12 = scmp.lt.s32.totalorder %s27_s12, %s27_s12 }
  0x1a   :  { %p111_p11 = scmp.ne.s32.totalorder %s27_s12, %s110_s30  ;;  %p116_p13 = scmp.lt.s32.totalorder %s110_s30, %s110_s30 }
  0x1c   :  { %p117_p0 = por %p116_p13, %p115_p12 }
  0x1e   :  { %p118_p1 = pnand %p117_p0, %p111_p11 }
  0x20   :  { %121 = shalt.err (!%p118_p1)
}
  0x21   :  { %29 = dma.hbm_to_vmem [thread:$0]  %s208_s1, 128, %s27_s12, [#allocation6]  }
  0x22   :  { %144 = dma.done.wait [#allocation3], 128  }
  0x23   :  { %145 = vsyncadd [#allocation3], 4294967168 }
  0x24   :  { %146 = dma.done.wait [#allocation6], 128  }
  0x25   :  { %147 = vsyncadd [#allocation6], 4294967168  ;;  %v36_v0 = vld [vmem:[#allocation5] sm:$0xff]  ;;  %s152_s4 = smov 32   ;;  %s153_s5 = smov 96   ;;  %vm47_vm0 = vcmask 261120  }
  0x26   :  { %38 = vrot.lane.b32.xlu0 %v36_v0, %s152_s4  ;;  %44 = vrot.lane.b32.xlu1 %v36_v0, %s153_s5  ;;  %s154_s6 = smov 64   ;;  %vm49_vm1 = vcmask 523264   ;;  %vm51_vm2 = vcmask 785408   ;;  %v53_v5 = vld [vmem:[#allocation2] sm:$0xff]  ;;  %s155_s1 = smov [#allocation7]  }
  0x27   :  { %s62_s7 = sshll.u32 %s155_s1, 4  ;;  %s63_s7 = int_to_ptr.vmem [resolvable:$true] %s62_s7 }
  0x28   :  { %s122_s8 = scalar_lea.vmem %s63_s7, 128  ;;  %p127_p3 = scmp.lt.s32.totalorder %s63_s7, %s63_s7 }
  0x29   :  { %p123_p2 = scmp.ne.s32.totalorder %s63_s7, %s122_s8  ;;  %p128_p4 = scmp.lt.s32.totalorder %s122_s8, %s122_s8 }
  0x2a   :  { %41 = vrot.lane.b32.xlu0 %v36_v0, %s154_s6 }
  0x2b   :  { %p129_p5 = por %p128_p4, %p127_p3 }
  0x2d   :  { %p130_p6 = pnand %p129_p5, %p123_p2 }
  0x98   :  { %v39_v1 = vpop.permute.xlu0 %38  ;;  %v45_v2 = vpop.permute.xlu1 %44 }
  0x99   :  { %v48_v3 = vsel %vm47_vm0, %v36_v0, %v39_v1 }
  0x9c   :  { %v42_v4 = vpop.permute.xlu0 %41 }
  0x9d   :  { %v50_v6 = vsel %vm49_vm1, %v48_v3, %v42_v4 }
  0x9e   :  { %v52_v7 = vsel %vm51_vm2, %v50_v6, %v45_v2 }
  0x9f   :  { %v54_v8 = vadd.f32 %v53_v5, %v52_v7 }
  0xa1   :  { %55 = vst [vmem:[#allocation7] sm:$0xff] %v54_v8 }
  0xa2   :  { %133 = shalt.err (!%p130_p6)
}
  0xa3   :  { %s134_s11 = scalar_lea.hbm %s209_s2, 128 }
  0xa4   :  { %p135_p7 = scmp.ne.s32.totalorder %s209_s2, %s134_s11  ;;  %p138_p8 = scmp.lt.u32.totalorder %s134_s11, %s209_s2 }
  0xa6   :  { %p140_p9 = pnand %p138_p8, %p135_p7 }
  0xa8   :  { %143 = shalt.err (!%p140_p9)
}
  0xa9   :  { %65 = dma.vmem_to_hbm [thread:$0]  %s63_s7, 128, %s209_s2, [#allocation4]  }
  0xaa   :  { %148 = dma.done.wait [#allocation4], 128  }
  0xab   :  { %149 = vsyncadd [#allocation4], 4294967168 }
  0xac   :  { %69 = vsyncpa [#allocation3], 1 }
  0xad   :  { %70 = vsyncpa [#allocation6], 1 }
  0xae   :  { %71 = vsyncpa [#allocation4], 1 }

</bundles_post_ra>
